<compile_context>
chip_gen: v6e
topology: v6e:2x2x1
jax: 0.10.0
libtpu: 0.0.40
codegen_flags: <defaults>
</compile_context>

<pallas_src>
import jax
import jax.numpy as jnp
from jax.experimental import pallas as pl
from jax.experimental.pallas import tpu as pltpu

_LANES = 128
_COLS = 8 * _LANES                 # 1024 lane-dense columns per slab row
_SMALL_FASTPATH_ELEMS = 1 << 20    # below this, plain XLA add is faster
_VMEM_BUDGET_BYTES = 24 * 1024 * 1024   # conservative across v5e / v6e / v7x
_MAX_TILE_ROWS = 1024              # cap per-step tile at ~4 MiB (f32)


def _sublane_pack(dtype) -> int:
    """Rows pack along sublanes for sub-32-bit dtypes: 8 f32, 16 bf16, 32 int8."""
    nbytes = jnp.dtype(dtype).itemsize
    return max(8, 32 // max(1, nbytes))


def _fusion_add_kernel(depth_ref, rgb_ref, out_ref):
    # Pure VPU elementwise add on the current VMEM tile.
    out_ref[...] = depth_ref[...] + rgb_ref[...]


def fusion_v1(depth: jax.Array, rgb: jax.Array, *, force_pallas: bool = False) -> jax.Array:
    """Pallas implementation of FusionV1.forward: fusion = depth + rgb."""
    assert depth.shape == rgb.shape, "depth and rgb must have identical shapes"
    assert depth.dtype == rgb.dtype, "depth and rgb must have identical dtypes"

    orig_shape = depth.shape
    total = depth.size
    dtype = depth.dtype
    itemsize = jnp.dtype(dtype).itemsize

    # Fast path: for tiny adds the fixed pallas_call launch/step overhead dominates.
    if total == 0 or (not force_pallas and total < _SMALL_FASTPATH_ELEMS):
        return depth + rgb

    sub = _sublane_pack(dtype)

    # Flatten to a lane-dense 2D slab (rows, _COLS). Pad the tail once so the last
    # dim is a full multiple of 128 lanes and rows a multiple of the sublane pack
    # (keeps all stores unmasked and DMAs rectangular).
    row_quantum = sub * _COLS
    padded_total = ((total + row_quantum - 1) // row_quantum) * row_quantum
    pad = padded_total - total

    d_flat = depth.reshape(-1)
    r_flat = rgb.reshape(-1)
    if pad:
        d_flat = jnp.pad(d_flat, (0, pad))
        r_flat = jnp.pad(r_flat, (0, pad))

    rows = padded_total // _COLS
    d2 = d_flat.reshape(rows, _COLS)
    r2 = r_flat.reshape(rows, _COLS)

    # Tile rows from a VMEM budget: 3 arrays x 2 double-buffers x tile bytes.
    max_tile_bytes = _VMEM_BUDGET_BYTES // (3 * 2)
    tile_r = max_tile_bytes // (_COLS * itemsize)
    tile_r = max(sub, (tile_r // sub) * sub)   # multiple of the sublane pack
    tile_r = min(tile_r, _MAX_TILE_ROWS, rows)

    grid = (pl.cdiv(rows, tile_r),)

    out2 = pl.pallas_call(
        _fusion_add_kernel,
        out_shape=jax.ShapeDtypeStruct((rows, _COLS), dtype),
        grid=grid,
        in_specs=[
            pl.BlockSpec((tile_r, _COLS), lambda i: (i, 0)),
            pl.BlockSpec((tile_r, _COLS), lambda i: (i, 0)),
        ],
        out_specs=pl.BlockSpec((tile_r, _COLS), lambda i: (i, 0)),
        compiler_params=pltpu.CompilerParams(
            dimension_semantics=("parallel",),
            vmem_limit_bytes=48 * 1024 * 1024,
        ),
        cost_estimate=pl.CostEstimate(
            flops=padded_total,
            transcendentals=0,
            bytes_accessed=3 * padded_total * itemsize,
        ),
    )(d2, r2)

    out_flat = out2.reshape(-1)
    if pad:
        out_flat = out_flat[:total]
    return out_flat.reshape(orig_shape)


if __name__ == "__main__":
    key = jax.random.PRNGKey(0)
    k_depth, k_rgb = jax.random.split(key)

    # 1) Small NCHW shapes consistent with the module's forward (fast path).
    depth = jax.random.normal(k_depth, (2, 4, 16, 16), dtype=jnp.float32)
    rgb = jax.random.normal(k_rgb, (2, 4, 16, 16), dtype=jnp.float32)

    out_small = fusion_v1(depth, rgb)
    jax.block_until_ready(out_small)
    ref_small = depth + rgb
    assert out_small.shape == ref_small.shape
    assert jnp.allclose(out_small, ref_small, atol=1e-6), "mismatch vs reference add (fast path)"

    # 2) Same small shape forced through the Pallas kernel (exercises tail padding).
    out_forced = fusion_v1(depth, rgb, force_pallas=True)
    jax.block_until_ready(out_forced)
    assert jnp.allclose(out_forced, ref_small, atol=1e-6), "mismatch vs reference add (pallas, padded)"

    # 3) Moderately sized NCHW tensor: exercises the tiled multi-step pipelined grid
    #    (2400 slab rows -> 3 grid steps with a partial tail block).
    k_d2, k_r2 = jax.random.split(jax.random.PRNGKey(1))
    depth_big = jax.random.normal(k_d2, (2, 16, 240, 320), dtype=jnp.float32)
    rgb_big = jax.random.normal(k_r2, (2, 16, 240, 320), dtype=jnp.float32)

    out_big = fusion_v1(depth_big, rgb_big)
    jax.block_until_ready(out_big)
    ref_big = depth_big + rgb_big
    assert jnp.allclose(out_big, ref_big, atol=1e-6), "mismatch vs reference add (pallas, tiled)"

    print("KERNEL_OK")
</pallas_src>

<mosaic_0001>
module attributes {stable_mosaic.version = 11 : i64} {
  func.func @_fusion_add_kernel(%arg0: i32, %arg1: memref<8x1024xf32, #tpu.memory_space<vmem>>, %arg2: memref<8x1024xf32, #tpu.memory_space<vmem>>, %arg3: memref<8x1024xf32, #tpu.memory_space<vmem>>) attributes {dimension_semantics = [#tpu.dimension_semantics<parallel>], iteration_bounds = array<i64: 1>, scalar_prefetch = 0 : i64, scratch_operands = 0 : i64, tpu.core_type = #tpu.core_type<tc>, window_params = [{transform_indices = @transform_0, window_bounds = array<i64: 8, 1024>}, {transform_indices = @transform_1, window_bounds = array<i64: 8, 1024>}, {transform_indices = @transform_2, window_bounds = array<i64: 8, 1024>}]} {
    %c0 = arith.constant 0 : index
    %c0_0 = arith.constant 0 : index
    %0 = vector.load %arg1[%c0, %c0_0] : memref<8x1024xf32, #tpu.memory_space<vmem>>, vector<8x1024xf32>
    %c0_1 = arith.constant 0 : index
    %c0_2 = arith.constant 0 : index
    %1 = vector.load %arg2[%c0_1, %c0_2] : memref<8x1024xf32, #tpu.memory_space<vmem>>, vector<8x1024xf32>
    %2 = arith.addf %0, %1 : vector<8x1024xf32>
    %c0_3 = arith.constant 0 : index
    %c0_4 = arith.constant 0 : index
    %3 = vector.load %arg3[%c0_3, %c0_4] : memref<8x1024xf32, #tpu.memory_space<vmem>>, vector<8x1024xf32>
    tpu.vector_store %arg3[%c0_3, %c0_4], %2 {strides = array<i32>} : memref<8x1024xf32, #tpu.memory_space<vmem>>, vector<8x1024xf32>,
    return
  }
  func.func @transform_0(%arg0: i32) -> (i32, i32) {
    %c0_i32 = arith.constant 0 : i32
    %c0_i32_0 = arith.constant 0 : i32
    return %arg0, %c0_i32 : i32, i32
  }
  func.func @transform_1(%arg0: i32) -> (i32, i32) {
    %c0_i32 = arith.constant 0 : i32
    %c0_i32_0 = arith.constant 0 : i32
    return %arg0, %c0_i32 : i32, i32
  }
  func.func @transform_2(%arg0: i32) -> (i32, i32) {
    %c0_i32 = arith.constant 0 : i32
    %c0_i32_0 = arith.constant 0 : i32
    return %arg0, %c0_i32 : i32, i32
  }
}

</mosaic_0001>

<bundles_post_ra>
// kernel: tpu_custom_call.1
= control target key start
LH: loop header
LB: loop body
LE: loop exit
PB: predicated region body
PF: predicated region fallthrough
CT: control target
= control target key end

     0   :  { %7 = vsyncpa [#allocation3], 0  ;;  %s180_s0 = inlined_call_operand.hbm [shape: f32[8,1024], index: 0, kind: input, shape index: {}]   ;;  %s181_s1 = inlined_call_operand.hbm [shape: f32[8,1024], index: 1, kind: input, shape index: {}]   ;;  %s182_s2 = inlined_call_operand.hbm [shape: f32[8,1024], index: 2, kind: output, shape index: {}]  }
   0x1   :  { %8 = vsyncpa [#allocation6], 0 }
   0x2   :  { %9 = vsyncpa [#allocation4], 0  ;;  %s153_s9 = smov [#allocation2]   ;;  %s154_s11 = smov [#allocation5]  }
   0x3   :  { %s16_s10 = sshll.u32 %s153_s9, 4  ;;  %s26_s12 = sshll.u32 %s154_s11, 4  ;;  %s17_s10 = int_to_ptr.vmem [resolvable:$true] %s16_s10  ;;  %s27_s12 = int_to_ptr.vmem [resolvable:$true] %s26_s12 }
   0x4   :  { %s95_s13 = scalar_lea.vmem %s17_s10, 1024  ;;  %p100_p1 = scmp.lt.s32.totalorder %s17_s10, %s17_s10 }
   0x5   :  { %p96_p0 = scmp.ne.s32.totalorder %s17_s10, %s95_s13  ;;  %p101_p2 = scmp.lt.s32.totalorder %s95_s13, %s95_s13 }
   0x7   :  { %p102_p3 = por %p101_p2, %p100_p1 }
   0x9   :  { %p103_p4 = pnand %p102_p3, %p96_p0 }
   0xb   :  { %106 = shalt.err (!%p103_p4)
}
   0xc   :  { %19 = dma.hbm_to_vmem [thread:$0]  %s180_s0, 1024, %s17_s10, [#allocation3]  }
   0xd   :  { %s115_s16 = scalar_lea.vmem %s27_s12, 1024  ;;  %p120_p6 = scmp.lt.s32.totalorder %s27_s12, %s27_s12 }
   0xe   :  { %p116_p5 = scmp.ne.s32.totalorder %s27_s12, %s115_s16  ;;  %p121_p7 = scmp.lt.s32.totalorder %s115_s16, %s115_s16 }
  0x10   :  { %p122_p8 = por %p121_p7, %p120_p6 }
  0x12   :  { %p123_p9 = pnand %p122_p8, %p116_p5 }
  0x14   :  { %126 = shalt.err (!%p123_p9)
}
  0x15   :  { %29 = dma.hbm_to_vmem [thread:$0]  %s181_s1, 1024, %s27_s12, [#allocation6]  }
  0x16   :  { %147 = dma.done.wait [#allocation3], 1024  }
  0x17   :  { %148 = vsyncadd [#allocation3], 4294966272 }
  0x18   :  { %149 = dma.done.wait [#allocation6], 1024  }
  0x19   :  { %150 = vsyncadd [#allocation6], 4294966272  ;;  %v36_v0 = vld [vmem:[#allocation2] sm:$0xff]  ;;  %v37_v2 = vld [vmem:[#allocation2 + $0x8] sm:$0xff]  ;;  %s155_s0 = smov [#allocation7]  }
  0x1a   :  { %v44_v1 = vld [vmem:[#allocation5] sm:$0xff]  ;;  %v45_v4 = vld [vmem:[#allocation5 + $0x8] sm:$0xff]  ;;  %v38_v5 = vld [vmem:[#allocation2 + $0x10] sm:$0xff]  ;;  %s74_s1 = sshll.u32 %s155_s0, 4  ;;  %s75_s1 = int_to_ptr.vmem [resolvable:$true] %s74_s1 }
  0x1b   :  { %v52_v3 = vadd.f32 %v44_v1, %v36_v0  ;;  %v46_v6 = vld [vmem:[#allocation5 + $0x10] sm:$0xff]  ;;  %v53_v7 = vadd.f32 %v45_v4, %v37_v2  ;;  %v39_v9 = vld [vmem:[#allocation2 + $0x18] sm:$0xff]  ;;  %v40_v11 = vld [vmem:[#allocation2 + $0x20] sm:$0xff]  ;;  %s127_s19 = scalar_lea.vmem %s75_s1, 1024  ;;  %p132_p11 = scmp.lt.s32.totalorder %s75_s1, %s75_s1 }
  0x1c   :  { %v54_v8 = vadd.f32 %v46_v6, %v38_v5  ;;  %v47_v10 = vld [vmem:[#allocation5 + $0x18] sm:$0xff]  ;;  %v48_v13 = vld [vmem:[#allocation5 + $0x20] sm:$0xff]  ;;  %v41_v14 = vld [vmem:[#allocation2 + $0x28] sm:$0xff]  ;;  %p128_p10 = scmp.ne.s32.totalorder %s75_s1, %s127_s19  ;;  %p133_p12 = scmp.lt.s32.totalorder %s127_s19, %s127_s19 }
  0x1d   :  { %60 = vst [vmem:[#allocation7] sm:$0xff] %v52_v3  ;;  %v55_v12 = vadd.f32 %v47_v10, %v39_v9  ;;  %v49_v15 = vld [vmem:[#allocation5 + $0x28] sm:$0xff]  ;;  %61 = vst [vmem:[#allocation7 + $0x8] sm:$0xff] %v53_v7  ;;  %v56_v16 = vadd.f32 %v48_v13, %v40_v11  ;;  %v42_v18 = vld [vmem:[#allocation2 + $0x30] sm:$0xff] }
  0x1e   :  { %62 = vst [vmem:[#allocation7 + $0x10] sm:$0xff] %v54_v8  ;;  %v57_v17 = vadd.f32 %v49_v15, %v41_v14  ;;  %v50_v19 = vld [vmem:[#allocation5 + $0x30] sm:$0xff]  ;;  %v43_v20 = vld [vmem:[#allocation2 + $0x38] sm:$0xff]  ;;  %p134_p13 = por %p133_p12, %p132_p11 }
  0x1f   :  { %63 = vst [vmem:[#allocation7 + $0x18] sm:$0xff] %v55_v12  ;;  %v58_v21 = vadd.f32 %v50_v19, %v42_v18  ;;  %v51_v22 = vld [vmem:[#allocation5 + $0x38] sm:$0xff]  ;;  %64 = vst [vmem:[#allocation7 + $0x20] sm:$0xff] %v56_v16 }
  0x20   :  { %65 = vst [vmem:[#allocation7 + $0x28] sm:$0xff] %v57_v17  ;;  %v59_v23 = vadd.f32 %v51_v22, %v43_v20  ;;  %p135_p0 = pnand %p134_p13, %p128_p10 }
  0x21   :  { %66 = vst [vmem:[#allocation7 + $0x30] sm:$0xff] %v58_v21 }
  0x22   :  { %67 = vst [vmem:[#allocation7 + $0x38] sm:$0xff] %v59_v23 }
  0x23   :  { %138 = shalt.err (!%p135_p0)
}
  0x24   :  { %77 = dma.vmem_to_hbm [thread:$0]  %s75_s1, 1024, %s182_s2, [#allocation4]  }
  0x25   :  { %151 = dma.done.wait [#allocation4], 1024  }
  0x26   :  { %152 = vsyncadd [#allocation4], 4294966272 }
  0x27   :  { %81 = vsyncpa [#allocation3], 1 }
  0x28   :  { %82 = vsyncpa [#allocation6], 1 }
  0x29   :  { %83 = vsyncpa [#allocation4], 1 }

</bundles_post_ra>
